<compile_context>
chip_gen: v5e
topology: v5e:2x2
jax: 0.10.0
libtpu: 0.0.40
codegen_flags: <defaults>
</compile_context>

<pallas_src>
import numpy as np
import jax
import jax.numpy as jnp
from jax import lax
from jax.experimental import pallas as pl
from jax.experimental.pallas import tpu as pltpu

# ---- module constants (from mrnn/mrnn.py) ----
NUM_INPUT_FEATURES = 20
NUM_MODULES = 3
NPM = 100                          # num_neurons_per_module
NUM_NEURONS = NPM * NUM_MODULES    # 300
OUTPUT_DIM = 50
SPARSITY = 0.1
SYNAPTIC_SCALING = 1.2
# tau = 100 / tick = 10, dt = 1  -> forward hardcodes "tdx / 10"

# ---- TPU-friendly padded sizes ----
N_PAD = 384                        # neurons padded to a lane multiple (300 -> 3*128)
OUT_PAD = 128                      # fc output padded (50 -> 128): unmasked stores
FC_K = 128                         # lane-aligned fc input slice (first module 100 -> 128)
K_IN = NUM_INPUT_FEATURES + 2      # [image | hold | 1(bias)] folded input width


def _retanh(v):
    # TODO(synk): utils.ReTanh source not provided; standard ReTanh = max(0, tanh(x)).
    return jnp.maximum(jnp.tanh(v), 0.0)


def michaels_unroll_kernel(data_ref, x0_ref, jT_ref, win_ref, fcwT_ref, fcb_ref,
                           ret_ref, x_out_ref):
    """Single invocation: in-kernel fori_loop over T timesteps, state in carries."""
    T = data_ref.shape[0]
    bsz = data_ref.shape[1]

    # ---- t == 0 init: x = tile(x0, (B,1)); prev = ReTanh(x) ----
    # All batch rows are identical, so the tanh runs on a single (1, N_PAD) row.
    x0_row = x0_ref[...]                                         # (1, N_PAD) f32
    x_init = jnp.broadcast_to(x0_row, (bsz, N_PAD))              # (B, N_PAD) f32
    prev_init = jnp.broadcast_to(_retanh(x0_row),
                                 (bsz, N_PAD)).astype(jnp.bfloat16)

    # hoisted (loop-invariant) broadcast of the fc bias
    fcb_b = jnp.broadcast_to(fcb_ref[...], (bsz, OUT_PAD))       # (B, OUT_PAD) f32

    def step(t, carry):
        x, prev = carry                                          # f32 / bf16 (B, N_PAD)

        # recur = prev_output @ J.T   (bf16 operands, f32 accumulation on MXU)
        recur = jnp.dot(prev, jT_ref[...],
                        preferred_element_type=jnp.float32)

        # inp = [image.T | hold.T | 1] @ [I.T ; S.T ; B.T]  (hold*S + bias folded in)
        lhs = data_ref[t].astype(jnp.bfloat16)                   # (B, K_IN)
        inp = jnp.dot(lhs, win_ref[...],
                      preferred_element_type=jnp.float32)

        # pre_response = x + tdx/10 with tdx = -x + recur + inp  ->  0.9*x + 0.1*(...)
        pre = 0.9 * x + 0.1 * (recur + inp)
        out = _retanh(pre)

        # ret_t = fc(output[:, :npm]); fcwT rows >= NPM are zero so the
        # lane-aligned 128-wide slice is exactly equivalent to the 100-wide one.
        ret_ref[t] = (
            jnp.dot(out[:, :FC_K].astype(jnp.bfloat16), fcwT_ref[...],
                    preferred_element_type=jnp.float32)
            + fcb_b
        )
        return pre, out.astype(jnp.bfloat16)

    x_fin, _ = lax.fori_loop(0, T, step, (x_init, prev_init))

    # final hidden state written back once
    x_out_ref[...] = x_fin


def michaels_rnn_unroll(data_seq, params):
    """Fused multi-step forward.

    data_seq: (T, num_input_features + 1, batch) — per-step [image; hold] exactly as
              fed to MichaelsRNN.forward().  T=1 reproduces a single forward() call.

    Returns (ret, x, prev_output):
      ret:         (T, batch, output_dim)  per-step fc output
      x:           (batch, num_neurons)    final hidden pre-activation state
      prev_output: (batch, num_neurons)    final ReTanh(x)
    """
    T = data_seq.shape[0]
    bsz = data_seq.shape[2]
    f32, bf16 = jnp.float32, jnp.bfloat16

    J, I, S, Bb, x0, fc_w, fc_b = (params[k] for k in
                                   ("J", "I", "S", "B", "x0", "fc_w", "fc_b"))

    # ---- glue: folded / padded operands ----
    image = jnp.swapaxes(data_seq[:, :NUM_INPUT_FEATURES, :], 1, 2)      # (T, B, F)
    hold = jnp.swapaxes(data_seq[:, NUM_INPUT_FEATURES:, :], 1, 2)       # (T, B, 1)
    ones = jnp.ones((T, bsz, 1), f32)
    data_comb = jnp.concatenate(
        [image.astype(f32), hold.astype(f32), ones], axis=-1)            # (T, B, K_IN)

    jT = jnp.zeros((N_PAD, N_PAD), bf16).at[:NUM_NEURONS, :NUM_NEURONS].set(
        J.T.astype(bf16))
    win = jnp.zeros((K_IN, N_PAD), bf16)
    win = win.at[:NUM_INPUT_FEATURES, :NUM_NEURONS].set(I.T.astype(bf16))
    win = win.at[NUM_INPUT_FEATURES, :NUM_NEURONS].set(S[:, 0].astype(bf16))
    win = win.at[NUM_INPUT_FEATURES + 1, :NUM_NEURONS].set(Bb[:, 0].astype(bf16))
    fcwT = jnp.zeros((FC_K, OUT_PAD), bf16).at[:NPM, :OUTPUT_DIM].set(
        fc_w.T.astype(bf16))
    fcb = jnp.zeros((1, OUT_PAD), f32).at[0, :OUTPUT_DIM].set(fc_b.astype(f32))
    x0p = jnp.zeros((1, N_PAD), f32).at[0, :NUM_NEURONS].set(x0.astype(f32))

    inputs = (data_comb, x0p, jT, win, fcwT, fcb)

    vmem_spec = pl.BlockSpec(memory_space=pltpu.MemorySpace.VMEM)

    ret_pad, x_pad = pl.pallas_call(
        michaels_unroll_kernel,
        out_shape=(
            jax.ShapeDtypeStruct((T, bsz, OUT_PAD), jnp.float32),
            jax.ShapeDtypeStruct((bsz, N_PAD), jnp.float32),
        ),
        in_specs=[vmem_spec] * len(inputs),
        out_specs=(vmem_spec, vmem_spec),
    )(*inputs)

    ret = ret_pad[:, :, :OUTPUT_DIM]
    x_fin = x_pad[:, :NUM_NEURONS]
    prev_fin = _retanh(x_fin)     # prev_output recomputed in wrapper (dropped as kernel out)
    return ret, x_fin, prev_fin


def init_params(key):
    """Deterministic synthetic init following MichaelsRNN.__init__ shapes/masks."""
    ks = jax.random.split(key, 16)
    Bbias = jax.random.uniform(ks[0], (NUM_NEURONS, 1), minval=-1.0, maxval=1.0)
    I = jax.random.normal(ks[1], (NUM_NEURONS, NUM_INPUT_FEATURES)) / np.sqrt(
        NUM_INPUT_FEATURES)
    I = I.at[-NPM:, :].set(0.0)
    S = jax.random.normal(ks[2], (NUM_NEURONS, 1))
    J = jnp.zeros((NUM_NEURONS, NUM_NEURONS), jnp.float32)
    for m in range(NUM_MODULES):
        blk = jax.random.normal(ks[3 + m], (NPM, NPM)) * (
            SYNAPTIC_SCALING / np.sqrt(NPM))
        s = m * NPM
        J = J.at[s:s + NPM, s:s + NPM].set(blk)
    for idx, (ob, ib) in enumerate(((1, 0), (2, 1), (0, 1), (1, 2))):
        vals = jax.random.normal(ks[6 + idx], (NPM, NPM)) / np.sqrt(NPM)
        mask = (jax.random.uniform(ks[10 + idx], (NPM, NPM)) < SPARSITY
                ).astype(jnp.float32)
        J = J.at[ob * NPM:(ob + 1) * NPM, ib * NPM:(ib + 1) * NPM].set(vals * mask)
    x0 = 0.1 * jax.random.normal(ks[14], (NUM_NEURONS,))
    bound = 1.0 / np.sqrt(NPM)
    kw, kb = jax.random.split(ks[15])
    fc_w = jax.random.uniform(kw, (OUTPUT_DIM, NPM), minval=-bound, maxval=bound)
    fc_b = jax.random.uniform(kb, (OUTPUT_DIM,), minval=-bound, maxval=bound)
    return dict(J=J, I=I, S=S, B=Bbias, x0=x0, fc_w=fc_w, fc_b=fc_b)


def reference_unroll(data_seq, params):
    """Pure-JAX f32 reference mirroring the PyTorch forward() called per timestep."""
    T = data_seq.shape[0]
    J, I, S, Bb, x0, fc_w, fc_b = (params[k] for k in
                                   ("J", "I", "S", "B", "x0", "fc_w", "fc_b"))
    x = None
    prev = None
    rets = []
    for t in range(T):
        image = data_seq[t, :NUM_INPUT_FEATURES, :]
        hold = data_seq[t, NUM_INPUT_FEATURES:, :]
        bsz = image.shape[1]
        if prev is None:
            x = jnp.tile(x0[None, :], (bsz, 1))
            prev = jnp.maximum(jnp.tanh(x), 0.0)
        recur = prev @ J.T
        inp = image.T @ I.T + hold.T * S.T
        tdx = -x + recur + inp + Bb.T
        pre = x + tdx / 10.0
        out = jnp.maximum(jnp.tanh(pre), 0.0)
        x = pre
        prev = out
        rets.append(out[:, :NPM] @ fc_w.T + fc_b)
    return jnp.stack(rets, axis=0), x, prev


if __name__ == "__main__":
    key = jax.random.PRNGKey(0)
    kp, kd, kh = jax.random.split(key, 3)
    params = init_params(kp)

    T, batch = 8, 8
    image_seq = jax.random.normal(kd, (T, NUM_INPUT_FEATURES, batch),
                                  dtype=jnp.float32)
    hold_seq = (jax.random.uniform(kh, (T, 1, batch)) > 0.5).astype(jnp.float32)
    data_seq = jnp.concatenate([image_seq, hold_seq], axis=1)     # (T, F+1, B)

    ret, x_fin, prev_fin = michaels_rnn_unroll(data_seq, params)
    jax.block_until_ready((ret, x_fin, prev_fin))

    ref_ret, ref_x, ref_prev = reference_unroll(data_seq, params)
    assert ret.shape == (T, batch, OUTPUT_DIM)
    assert x_fin.shape == (batch, NUM_NEURONS)
    assert prev_fin.shape == (batch, NUM_NEURONS)
    np.testing.assert_allclose(np.asarray(ret), np.asarray(ref_ret),
                               rtol=2e-2, atol=2e-2)
    np.testing.assert_allclose(np.asarray(x_fin), np.asarray(ref_x),
                               rtol=2e-2, atol=2e-2)
    np.testing.assert_allclose(np.asarray(prev_fin), np.asarray(ref_prev),
                               rtol=2e-2, atol=2e-2)

    print("KERNEL_OK")
</pallas_src>

<mosaic_0001>
module attributes {stable_mosaic.version = 11 : i64} {
  func.func @michaels_unroll_kernel(%arg0: memref<8x8x22xf32, #tpu.memory_space<vmem>>, %arg1: memref<1x384xf32, #tpu.memory_space<vmem>>, %arg2: memref<384x384xbf16, #tpu.memory_space<vmem>>, %arg3: memref<22x384xbf16, #tpu.memory_space<vmem>>, %arg4: memref<128x128xbf16, #tpu.memory_space<vmem>>, %arg5: memref<1x128xf32, #tpu.memory_space<vmem>>, %arg6: memref<8x8x128xf32, #tpu.memory_space<vmem>>, %arg7: memref<8x384xf32, #tpu.memory_space<vmem>>) attributes {dimension_semantics = [], scalar_prefetch = 0 : i64, scratch_operands = 0 : i64, tpu.core_type = #tpu.core_type<tc>} {
    %c0 = arith.constant 0 : index
    %c0_0 = arith.constant 0 : index
    %0 = vector.load %arg1[%c0, %c0_0] : memref<1x384xf32, #tpu.memory_space<vmem>>, vector<1x384xf32>
    %1 = vector.shape_cast %0 : vector<1x384xf32> to vector<1x384xf32>
    %2 = vector.broadcast %1 : vector<1x384xf32> to vector<8x384xf32>
    %3 = math.tanh %0 : vector<1x384xf32>
    %cst = arith.constant 0.000000e+00 : f32
    %4 = vector.broadcast %cst : f32 to vector<1x384xf32>
    %5 = arith.maximumf %3, %4 : vector<1x384xf32>
    %6 = vector.shape_cast %5 : vector<1x384xf32> to vector<1x384xf32>
    %7 = vector.broadcast %6 : vector<1x384xf32> to vector<8x384xf32>
    %8 = arith.truncf %7 : vector<8x384xf32> to vector<8x384xbf16>
    %c0_1 = arith.constant 0 : index
    %c0_2 = arith.constant 0 : index
    %9 = vector.load %arg5[%c0_1, %c0_2] : memref<1x128xf32, #tpu.memory_space<vmem>>, vector<1x128xf32>
    %10 = vector.shape_cast %9 : vector<1x128xf32> to vector<1x128xf32>
    %11 = vector.broadcast %10 : vector<1x128xf32> to vector<8x128xf32>
    %c0_i32 = arith.constant 0 : i32
    %c8_i32 = arith.constant 8 : i32
    %12 = arith.addi %c0_i32, %c8_i32 : i32
    %c1_i32 = arith.constant 1 : i32
    %13:2 = scf.for %arg8 = %c0_i32 to %12 step %c1_i32 iter_args(%arg9 = %2, %arg10 = %8) -> (vector<8x384xf32>, vector<8x384xbf16>)  : i32 {
      %c0_6 = arith.constant 0 : index
      %c0_7 = arith.constant 0 : index
      %15 = vector.load %arg2[%c0_6, %c0_7] : memref<384x384xbf16, #tpu.memory_space<vmem>>, vector<384x384xbf16>
      %cst_8 = arith.constant dense<0.000000e+00> : vector<8x384xf32>
      %16 = tpu.matmul %arg10, %15, %cst_8 {dimension_numbers = #tpu.dot_dimension_numbers<[1], [0], [0], [1], [0, 0, 1, 1], [], []>} : vector<8x384xbf16>, vector<384x384xbf16>, vector<8x384xf32> -> vector<8x384xf32>
      %17 = arith.index_cast %arg8 : i32 to index
      %c0_9 = arith.constant 0 : index
      %c0_10 = arith.constant 0 : index
      %18 = vector.load %arg0[%17, %c0_9, %c0_10] : memref<8x8x22xf32, #tpu.memory_space<vmem>>, vector<1x8x22xf32>
      %19 = vector.shape_cast %18 : vector<1x8x22xf32> to vector<8x22xf32>
      %20 = arith.truncf %19 : vector<8x22xf32> to vector<8x22xbf16>
      %c0_11 = arith.constant 0 : index
      %c0_12 = arith.constant 0 : index
      %21 = vector.load %arg3[%c0_11, %c0_12] : memref<22x384xbf16, #tpu.memory_space<vmem>>, vector<22x384xbf16>
      %cst_13 = arith.constant dense<0.000000e+00> : vector<8x384xf32>
      %22 = tpu.matmul %20, %21, %cst_13 {dimension_numbers = #tpu.dot_dimension_numbers<[1], [0], [0], [1], [0, 0, 1, 1], [], []>} : vector<8x22xbf16>, vector<22x384xbf16>, vector<8x384xf32> -> vector<8x384xf32>
      %cst_14 = arith.constant 0.899999976 : f32
      %23 = vector.broadcast %cst_14 : f32 to vector<8x384xf32>
      %24 = arith.mulf %23, %arg9 : vector<8x384xf32>
      %25 = arith.addf %16, %22 : vector<8x384xf32>
      %cst_15 = arith.constant 1.000000e-01 : f32
      %26 = vector.broadcast %cst_15 : f32 to vector<8x384xf32>
      %27 = arith.mulf %26, %25 : vector<8x384xf32>
      %28 = arith.addf %24, %27 : vector<8x384xf32>
      %29 = math.tanh %28 : vector<8x384xf32>
      %cst_16 = arith.constant 0.000000e+00 : f32
      %30 = vector.broadcast %cst_16 : f32 to vector<8x384xf32>
      %31 = arith.maximumf %29, %30 : vector<8x384xf32>
      %32 = vector.extract_strided_slice %31 {offsets = [0, 0], sizes = [8, 128], strides = [1, 1]} : vector<8x384xf32> to vector<8x128xf32>
      %33 = arith.truncf %32 : vector<8x128xf32> to vector<8x128xbf16>
      %c0_17 = arith.constant 0 : index
      %c0_18 = arith.constant 0 : index
      %34 = vector.load %arg4[%c0_17, %c0_18] : memref<128x128xbf16, #tpu.memory_space<vmem>>, vector<128x128xbf16>
      %cst_19 = arith.constant dense<0.000000e+00> : vector<8x128xf32>
      %35 = tpu.matmul %33, %34, %cst_19 {dimension_numbers = #tpu.dot_dimension_numbers<[1], [0], [0], [1], [0, 0, 1, 1], [], []>} : vector<8x128xbf16>, vector<128x128xbf16>, vector<8x128xf32> -> vector<8x128xf32>
      %36 = arith.addf %35, %11 : vector<8x128xf32>
      %37 = arith.index_cast %arg8 : i32 to index
      %c0_20 = arith.constant 0 : index
      %c0_21 = arith.constant 0 : index
      %38 = vector.load %arg6[%37, %c0_20, %c0_21] : memref<8x8x128xf32, #tpu.memory_space<vmem>>, vector<1x8x128xf32>
      %39 = vector.shape_cast %38 : vector<1x8x128xf32> to vector<8x128xf32>
      %40 = vector.shape_cast %36 : vector<8x128xf32> to vector<1x8x128xf32>
      tpu.vector_store %arg6[%37, %c0_20, %c0_21], %40 {strides = array<i32>} : memref<8x8x128xf32, #tpu.memory_space<vmem>>, vector<1x8x128xf32>,
      %41 = arith.truncf %31 : vector<8x384xf32> to vector<8x384xbf16>
      scf.yield %28, %41 : vector<8x384xf32>, vector<8x384xbf16>
    }
    %c8_i32_3 = arith.constant 8 : i32
    %c0_4 = arith.constant 0 : index
    %c0_5 = arith.constant 0 : index
    %14 = vector.load %arg7[%c0_4, %c0_5] : memref<8x384xf32, #tpu.memory_space<vmem>>, vector<8x384xf32>
    tpu.vector_store %arg7[%c0_4, %c0_5], %13#0 {strides = array<i32>} : memref<8x384xf32, #tpu.memory_space<vmem>>, vector<8x384xf32>,
    return
  }
}

</mosaic_0001>

<bundles_post_ra>
// kernel: tpu_custom_call.1
= control target key start
LH: loop header
LB: loop body
LE: loop exit
PB: predicated region body
PF: predicated region fallthrough
CT: control target
= control target key end

     0   :  { %13 = vsyncpa [#allocation3], 0  ;;  %s1875_s0 = inlined_call_operand.hbm [shape: f32[8,8,22], index: 0, kind: input, shape index: {}]   ;;  %s1876_s1 = inlined_call_operand.hbm [shape: f32[1,384], index: 1, kind: input, shape index: {}]   ;;  %s1877_s2 = inlined_call_operand.hbm [shape: bf16[384,384], index: 2, kind: input, shape index: {}]   ;;  %s1878_s3 = inlined_call_operand.hbm [shape: bf16[22,384], index: 3, kind: input, shape index: {}]   ;;  %s1879_s4 = inlined_call_operand.hbm [shape: bf16[128,128], index: 4, kind: input, shape index: {}]   ;;  %s1880_s5 = inlined_call_operand.vmem [shape: f32[1,128], index: 5, kind: input, shape index: {}]   ;;  %s1881_s6 = inlined_call_operand.hbm [shape: f32[8,8,128], index: 6, kind: output, shape index: {0}]   ;;  %s1882_s7 = inlined_call_operand.hbm [shape: f32[8,384], index: 7, kind: output, shape index: {1}]  }
   0x1   :  { %14 = vsyncpa [#allocation6], 0 }
   0x2   :  { %15 = vsyncpa [#allocation9], 0 }
   0x3   :  { %16 = vsyncpa [#allocation4], 0  ;;  %s36_s26 = sshll.u32 %s1876_s1, 4  ;;  %s37_s26 = int_to_ptr.hbm [resolvable:$true] %s36_s26 }
   0x4   :  { %17 = vsyncpa [#allocation13], 0  ;;  %s1709_s27 = smov [#allocation5]   ;;  %s59_s8 = sshll.u32 %s1878_s3, 4  ;;  %s60_s8 = int_to_ptr.hbm [resolvable:$true] %s59_s8 }
   0x5   :  { %s38_s28 = sshll.u32 %s1709_s27, 4  ;;  %s1710_s9 = smov [#allocation8]   ;;  %s39_s28 = int_to_ptr.vmem [resolvable:$true] %s38_s28 }
   0x6   :  { %41 = dma.hbm_to_vmem [thread:$0]  %s37_s26, 48, %s39_s28, [#allocation6]  }
   0x7   :  { %s61_s10 = sshll.u32 %s1710_s9, 4  ;;  %s22_s13 = sshll.u32 %s1875_s0, 4  ;;  %s62_s10 = int_to_ptr.vmem [resolvable:$true] %s61_s10  ;;  %s23_s13 = int_to_ptr.hbm [resolvable:$true] %s22_s13 }
   0x8   :  { %s1711_s1 = smov 192   ;;  %s1712_s14 = smov 12  }
   0x9   :  { %67 = dma.hbm_to_vmem [thread:$0]  %s60_s8, 576, %s62_s10, [#allocation9], %s1711_s1, %s1711_s1, %s1712_s14  }
   0xa   :  { %s1713_s15 = smov [#allocation2]   ;;  %s46_s19 = sshll.u32 %s1877_s2, 4  ;;  %s47_s19 = int_to_ptr.hbm [resolvable:$true] %s46_s19 }
   0xb   :  { %s24_s16 = sshll.u32 %s1713_s15, 4  ;;  %s1714_s3 = smov 128   ;;  %s25_s16 = int_to_ptr.vmem [resolvable:$true] %s24_s16 }
   0xc   :  { %s1715_s20 = smov 8   ;;  %s1716_s0 = smov [#allocation7]  }
   0xd   :  { %30 = dma.hbm_to_vmem [thread:$0]  %s23_s13, 1024, %s25_s16, [#allocation3], %s1714_s3, %s1714_s3, %s1715_s20  }
   0xe   :  { %s48_s21 = sshll.u32 %s1716_s0, 4  ;;  %s72_s24 = sshll.u32 %s1879_s4, 4  ;;  %s49_s21 = int_to_ptr.vmem [resolvable:$true] %s48_s21  ;;  %s73_s24 = int_to_ptr.hbm [resolvable:$true] %s72_s24 }
   0xf   :  { %54 = dma.hbm_to_vmem [thread:$0]  %s47_s19, 9216, %s49_s21, [#allocation6], %s1711_s1, %s1711_s1, %s1712_s14  }
  0x10   :  { %s1717_s25 = smov [#allocation10]   ;;  %s1718_s2 = smov 64  }
  0x11   :  { %s74_s26 = sshll.u32 %s1717_s25, 4  ;;  %s1719_s27 = smov 4   ;;  %s75_s26 = int_to_ptr.vmem [resolvable:$true] %s74_s26 }
  0x12   :  { %80 = dma.hbm_to_vmem [thread:$0]  %s73_s24, 1024, %s75_s26, [#allocation9], %s1718_s2, %s1718_s2, %s1719_s27  }
  0x13   :  { %1675 = dma.done.wait [#allocation3], 1024  }
  0x14   :  { %1676 = vsyncadd [#allocation3], 4294966272 }
  0x15   :  { %1677 = dma.done.wait [#allocation6], 9264  }
  0x16   :  { %1678 = vsyncadd [#allocation6], 4294958032 }
  0x17   :  { %1679 = dma.done.wait [#allocation9], 1600  }
  0x18   :  { %1680 = vsyncadd [#allocation9], 4294965696  ;;  %v104_v0 = vld [vmem:[#allocation5] sm:$0x7]  ;;  %s1795_s4 = smov 0  }
  0x19   :  { %v1783_v1 = vld [vmem:[%s1880_s5] ss:$0 sm:$0xff]  ;;  %v106_v2 = vperm.slane %v104_v0, 0   ;;  %v107_v3 = vperm.slane %v104_v0, 1   ;;  %v108_v4 = vperm.slane %v104_v0, 2   ;;  %1475 = vtanh.f32 %v104_v0 }
  0x1f   :  { %v1476_v5 = vpop.eup %1475 }
  0x20   :  { %v113_v6 = vmax.f32 %v1476_v5, 0.0 }
  0x22   :  { %v115_v7 = vperm.slane %v113_v6, 0  ;;  %v116_v8 = vperm.slane %v113_v6, 1  ;;  %v117_v9 = vperm.slane %v113_v6, 2 }
  0x24   :  { %v121_v10 = vpack.c.bf16 %v116_v8, %v115_v7   ;;  %v122_v11 = vpack.c.bf16 %v117_v9, %v117_v9  }
  0x25 LB: > { %v1096_v12 = vld [vmem:[#allocation7 + $0xa8] sm:$0xf]  ;;  %v1352_v13 = vld [vmem:[#allocation7 + $0xb0] sm:$0xf0]  ;;  %v242_v14 = vld [vmem:[#allocation8 + $0x18] sm:$0x77]  ;;  %s1707_s4 = sphi %s1795_s4, %s132_s4   ;;  %v1703_v2 = vphi %v106_v2, %v1885_v2   ;;  %v1699_v3 = vphi %v107_v3, %v1884_v3   ;;  %v1695_v4 = vphi %v108_v4, %v1883_v4   ;;  %v1691_v10 = vphi %v121_v10, %v928_v10   ;;  %v1687_v11 = vphi %v122_v11, %v929_v11  }
  0x26   : > { %v1097_v15 = vor.u32 %v1352_v13, %v1096_v12  ;;  %v256_v16 = vunpack.c.l.b16 %v242_v14  ;;  %vm272_vm0 = vcmask 1042432   ;;  %v243_v17 = vld [vmem:[#allocation8 + $0x20] sm:$0x7]  ;;  %v1192_v18 = vld [vmem:[#allocation7 + $0x168] sm:$0xf]  ;;  %v257_v19 = vunpack.c.h.b16 %v242_v14  ;;  %s994_s5 = sshll.u32 %s1707_s4, 3 }
  0x27   : > { %v258_v20 = vunpack.c.l.b16 %v243_v17  ;;  %v1376_v21 = vld [vmem:[#allocation7 + $0x170] sm:$0xf0]  ;;  %v1084_v22 = vld [vmem:[#allocation7 + $0x90] sm:$0xf]  ;;  %v1349_v23 = vld [vmem:[#allocation7 + $0x98] sm:$0xf0] }
  0x28   : > { %719 = vmatpush.bf16.msra.mxu3 %v1097_v15  ;;  %v262_v24 = vpack.c.b16 %v256_v16, %v256_v16  ;;  %v1193_v25 = vor.u32 %v1376_v21, %v1192_v18  ;;  %v1085_v26 = vor.u32 %v1349_v23, %v1084_v22  ;;  %v997_v27 = vld [vmem:[#allocation8] sm:$0xf]  ;;  %v1403_v28 = vld [vmem:[#allocation8 + $0x8] sm:$0xf0]  ;;  %v1005_v29 = vld [vmem:[#allocation8 + $0x8] sm:$0xf]  ;;  %v263_v30 = vpack.c.b16 %v257_v19, %v257_v19 }
  0x29   : > { %v264_v31 = vpack.c.b16 %v258_v20, %v258_v20  ;;  %v1404_v32 = vld [vmem:[#allocation8 + $0x10] sm:$0xf0]  ;;  %v1180_v33 = vld [vmem:[#allocation7 + $0x150] sm:$0xf]  ;;  %v1373_v34 = vld [vmem:[#allocation7 + $0x158] sm:$0xf0]  ;;  %v998_v40 = vor.u32 %v1403_v28, %v997_v27 }
  0x2a   : > { %v274_v35 = vsel %vm272_vm0, %v262_v24, 0  ;;  %732 = vmatpush.bf16.msra.mxu0 %v1193_v25  ;;  %v1181_v36 = vor.u32 %v1373_v34, %v1180_v33  ;;  %v1072_v37 = vld [vmem:[#allocation7 + $0x78] sm:$0xf]  ;;  %v1346_v38 = vld [vmem:[#allocation7 + $0x80] sm:$0xf0]  ;;  %v1006_v43 = vor.u32 %v1404_v32, %v1005_v29  ;;  %v277_v44 = vsel %vm272_vm0, %v263_v30, 0 }
  0x2b   : > { %288 = vmatpush.bf16.msra.mxu1 %v274_v35  ;;  %v280_v39 = vsel %vm272_vm0, %v264_v31, 0  ;;  %v1351_v41 = vld [vmem:[#allocation7 + $0xac] sm:$0xf]  ;;  %v1098_v42 = vld [vmem:[#allocation7 + $0xb4] sm:$0xf0]  ;;  %v1073_v47 = vor.u32 %v1346_v38, %v1072_v37  ;;  %s235_s30 = scalar_lea.vmem [#allocation2], %s994_s5 }
  0x2c   : > { %314 = vmatpush.bf16.msra.mxu2 %v280_v39  ;;  %720 = vmatpush.bf16.msra.mxu3 %v1085_v26  ;;  %v1168_v45 = vld [vmem:[#allocation7 + $0x138] sm:$0xf]  ;;  %v1370_v46 = vld [vmem:[#allocation7 + $0x140] sm:$0xf0]  ;;  %v1101_v48 = vor.u32 %v1351_v41, %v1098_v42  ;;  %v236_v49 = vld [vmem:[%s235_s30] sm:$0xff]  ;;  %vm268_vm1 = vcmask 179200  }
  0x2d   : > { %v1402_v50 = vld [vmem:[#allocation8 + $0x4] sm:$0xf]  ;;  %v999_v51 = vld [vmem:[#allocation8 + $0xc] sm:$0xf0]  ;;  %v1821_v52 = vpack.c.bf16 %v236_v49, %v236_v49  ;;  %v1169_v53 = vor.u32 %v1370_v46, %v1168_v45  ;;  %v1060_v54 = vld [vmem:[#allocation7 + $0x60] sm:$0xf] }
  0x2e   : > { %733 = vmatpush.bf16.msra.mxu0 %v1181_v36  ;;  %v1343_v55 = vld [vmem:[#allocation7 + $0x68] sm:$0xf0]  ;;  %v1348_v56 = vld [vmem:[#allocation7 + $0x94] sm:$0xf]  ;;  %v1086_v57 = vld [vmem:[#allocation7 + $0x9c] sm:$0xf0]  ;;  %v1002_v60 = vor.u32 %v1402_v50, %v999_v51 }
  0x2f   : > { %289 = vmatpush.bf16.msra.mxu1 %v998_v40  ;;  %v1288_v58 = vld [vmem:[#allocation7 + $0x228] sm:$0xf]  ;;  %v1400_v59 = vld [vmem:[#allocation7 + $0x230] sm:$0xf0]  ;;  %v1156_v61 = vld [vmem:[#allocation7 + $0x120] sm:$0xf]  ;;  %v1061_v63 = vor.u32 %v1343_v55, %v1060_v54  ;;  %v1089_v0 = vor.u32 %v1348_v56, %v1086_v57  ;;  %v326_v54 = vunpack.c.l.b16 %v1691_v10 }
  0x30   : > { %315 = vmatpush.bf16.msra.mxu2 %v1006_v43  ;;  %v1367_v62 = vld [vmem:[#allocation7 + $0x128] sm:$0xf0]  ;;  %721 = vmatpush.bf16.msra.mxu3 %v1073_v47  ;;  %v1048_v5 = vld [vmem:[#allocation7 + $0x48] sm:$0xf]  ;;  %v1340_v6 = vld [vmem:[#allocation7 + $0x50] sm:$0xf0]  ;;  %v1289_v7 = vor.u32 %v1400_v59, %v1288_v58 }
  0x31   : > { %v1157_v8 = vor.u32 %v1367_v62, %v1156_v61  ;;  %v1345_v9 = vld [vmem:[#allocation7 + $0x7c] sm:$0xf]  ;;  %v1074_v12 = vld [vmem:[#allocation7 + $0x84] sm:$0xf0]  ;;  %v1276_v13 = vld [vmem:[#allocation7 + $0x210] sm:$0xf]  ;;  %v1049_v17 = vor.u32 %v1340_v6, %v1048_v5 }
  0x32   : > { %1007 = vmatmul.msk.bf16.vlgmr.msra.gmra.mxu1 %vm268_vm1, %v1821_v52  ;;  %734 = vmatpush.bf16.msra.mxu0 %v1169_v53  ;;  %v1397_v14 = vld [vmem:[#allocation7 + $0x218] sm:$0xf0]  ;;  %v1144_v15 = vld [vmem:[#allocation7 + $0x108] sm:$0xf]  ;;  %v1364_v16 = vld [vmem:[#allocation7 + $0x110] sm:$0xf0]  ;;  %v1077_v18 = vor.u32 %v1345_v9, %v1074_v12  ;;  %v327_v12 = vunpack.c.h.b16 %v1691_v10 }
  0x33   : > { %301 = vmatpush.bf16.msrb.mxu1 %v277_v44  ;;  %1009 = vmatmul.msk.bf16.vlgmr.msra.gmra.mxu2 %vm268_vm1, %v1821_v52  ;;  %v1036_v19 = vld [vmem:[#allocation7 + $0x30] sm:$0xf]  ;;  %v1337_v20 = vld [vmem:[#allocation7 + $0x38] sm:$0xf0]  ;;  %v1277_v21 = vor.u32 %v1397_v14, %v1276_v13  ;;  %v1145_v22 = vor.u32 %v1364_v16, %v1144_v15  ;;  %v1342_v23 = vld [vmem:[#allocation7 + $0x64] sm:$0xf]  ;;  %v1831_v13 = vpack.c.b16 %v326_v54, %v326_v54 }
  0x34   : > { %758 = vmatpush.bf16.msrb.mxu2 %v1101_v48  ;;  %722 = vmatpush.bf16.msra.mxu3 %v1061_v63  ;;  %v1062_v24 = vld [vmem:[#allocation7 + $0x6c] sm:$0xf0]  ;;  %v1264_v25 = vld [vmem:[#allocation7 + $0x1f8] sm:$0xf]  ;;  %v1394_v26 = vld [vmem:[#allocation7 + $0x200] sm:$0xf0]  ;;  %v1037_v29 = vor.u32 %v1337_v20, %v1036_v19 }
  0x35   : > { %v1132_v27 = vld [vmem:[#allocation7 + $0xf0] sm:$0xf]  ;;  %v1361_v28 = vld [vmem:[#allocation7 + $0xf8] sm:$0xf0]  ;;  %v1065_v30 = vor.u32 %v1342_v23, %v1062_v24  ;;  %v1024_v31 = vld [vmem:[#allocation7 + $0x18] sm:$0xf]  ;;  %v1265_v33 = vor.u32 %v1394_v26, %v1264_v25 }
  0x36   : > { %735 = vmatpush.bf16.msra.mxu0 %v1157_v8  ;;  %v1334_v32 = vld [vmem:[#allocation7 + $0x20] sm:$0xf0]  ;;  %v1133_v34 = vor.u32 %v1361_v28, %v1132_v27  ;;  %v1339_v35 = vld [vmem:[#allocation7 + $0x4c] sm:$0xf]  ;;  %v1050_v36 = vld [vmem:[#allocation7 + $0x54] sm:$0xf0] }
  0x37   : > { %302 = vmatpush.bf16.msrb.mxu1 %v1002_v60  ;;  %v1252_v37 = vld [vmem:[#allocation7 + $0x1e0] sm:$0xf]  ;;  %v1391_v38 = vld [vmem:[#allocation7 + $0x1e8] sm:$0xf0]  ;;  %v1120_v39 = vld [vmem:[#allocation7 + $0xd8] sm:$0xf]  ;;  %v1025_v41 = vor.u32 %v1334_v32, %v1024_v31  ;;  %v1053_v42 = vor.u32 %v1339_v35, %v1050_v36 }
  0x38   : > { %759 = vmatpush.bf16.msrb.mxu2 %v1089_v0  ;;  %723 = vmatpush.bf16.msra.mxu3 %v1049_v17  ;;  %v1358_v40 = vld [vmem:[#allocation7 + $0xe0] sm:$0xf0]  ;;  %v1012_v43 = vld [vmem:[#allocation7] sm:$0xf]  ;;  %v1331_v44 = vld [vmem:[#allocation7 + $0x8] sm:$0xf0]  ;;  %v1253_v45 = vor.u32 %v1391_v38, %v1252_v37 }
  0x39   : > { %v1121_v46 = vor.u32 %v1358_v40, %v1120_v39  ;;  %v1336_v47 = vld [vmem:[#allocation7 + $0x34] sm:$0xf]  ;;  %v1038_v48 = vld [vmem:[#allocation7 + $0x3c] sm:$0xf0]  ;;  %v1240_v49 = vld [vmem:[#allocation7 + $0x1c8] sm:$0xf]  ;;  %v1013_v57 = vor.u32 %v1331_v44, %v1012_v43  ;;  %v328_v43 = vunpack.c.l.b16 %v1687_v11 }
  0x3a   : > { %736 = vmatpush.bf16.msra.mxu0 %v1145_v22  ;;  %v1388_v50 = vld [vmem:[#allocation7 + $0x1d0] sm:$0xf0]  ;;  %v1375_v51 = vld [vmem:[#allocation7 + $0x16c] sm:$0xf]  ;;  %v1194_v53 = vld [vmem:[#allocation7 + $0x174] sm:$0xf0]  ;;  %v1041_v58 = vor.u32 %v1336_v47, %v1038_v48  ;;  %v1833_v22 = vpack.c.b16 %v327_v12, %v327_v12 }
  0x3b   : > { %745 = vmatpush.bf16.msra.mxu1 %v1289_v7  ;;  %v1108_v55 = vld [vmem:[#allocation7 + $0xc0] sm:$0xf]  ;;  %v1355_v56 = vld [vmem:[#allocation7 + $0xc8] sm:$0xf0]  ;;  %v1290_v60 = vld [vmem:[#allocation7 + $0x234] sm:$0xf0]  ;;  %v1241_v61 = vor.u32 %v1388_v50, %v1240_v49  ;;  %v1197_v62 = vor.u32 %v1375_v51, %v1194_v53  ;;  %v1839_v11 = vpack.c.b16 %v328_v43, %v328_v43 }
  0x3c   : > { %760 = vmatpush.bf16.msrb.mxu2 %v1077_v18  ;;  %724 = vmatpush.bf16.msra.mxu3 %v1037_v29  ;;  %v1399_v59 = vld [vmem:[#allocation7 + $0x22c] sm:$0xf]  ;;  %v1333_v63 = vld [vmem:[#allocation7 + $0x1c] sm:$0xf]  ;;  %v1026_v0 = vld [vmem:[#allocation7 + $0x24] sm:$0xf0]  ;;  %v1109_v6 = vor.u32 %v1355_v56, %v1108_v55 }
  0x3d   : > { %v1228_v5 = vld [vmem:[#allocation7 + $0x1b0] sm:$0xf]  ;;  %v1385_v7 = vld [vmem:[#allocation7 + $0x1b8] sm:$0xf0]  ;;  %v1372_v8 = vld [vmem:[#allocation7 + $0x154] sm:$0xf]  ;;  %v1293_v14 = vor.u32 %v1399_v59, %v1290_v60  ;;  %v1029_v15 = vor.u32 %v1333_v63, %v1026_v0 }
  0x3e   : > { %737 = vmatpush.bf16.msra.mxu0 %v1133_v34  ;;  %v1182_v9 = vld [vmem:[#allocation7 + $0x15c] sm:$0xf0]  ;;  %v1396_v16 = vld [vmem:[#allocation7 + $0x214] sm:$0xf]  ;;  %v1229_v18 = vor.u32 %v1385_v7, %v1228_v5  ;;  %v1330_v20 = vld [vmem:[#allocation7 + $0x4] sm:$0xf] }
  0x3f   : > { %746 = vmatpush.bf16.msra.mxu1 %v1277_v21  ;;  %v1278_v17 = vld [vmem:[#allocation7 + $0x21c] sm:$0xf0]  ;;  %v1185_v19 = vor.u32 %v1372_v8, %v1182_v9  ;;  %v1216_v21 = vld [vmem:[#allocation7 + $0x198] sm:$0xf]  ;;  %v1382_v23 = vld [vmem:[#allocation7 + $0x1a0] sm:$0xf0] }
  0x40   : > { %761 = vmatpush.bf16.msrb.mxu2 %v1065_v30  ;;  %725 = vmatpush.bf16.msra.mxu3 %v1025_v41  ;;  %v1369_v10 = vld [vmem:[#allocation7 + $0x13c] sm:$0xf]  ;;  %v1170_v24 = vld [vmem:[#allocation7 + $0x144] sm:$0xf0]  ;;  %v1281_v25 = vor.u32 %v1396_v16, %v1278_v17  ;;  %v1200_v29 = vld [vmem:[#allocation7 + $0x170] sm:$0xf]  ;;  %v1217_v31 = vor.u32 %v1382_v23, %v1216_v21 }
  0x41   : > { %v1393_v26 = vld [vmem:[#allocation7 + $0x1fc] sm:$0xf]  ;;  %v1266_v28 = vld [vmem:[#allocation7 + $0x204] sm:$0xf0]  ;;  %v1173_v32 = vor.u32 %v1369_v10, %v1170_v24  ;;  %v1379_v34 = vld [vmem:[#allocation7 + $0x188] sm:$0xf0] }
  0x42   : > { %738 = vmatpush.bf16.msra.mxu0 %v1121_v46  ;;  %1008 = vmatmul.msk.bf16.vlgmr.msrb.gmra.mxu1 %vm268_vm1, %v1821_v52  ;;  %v1014_v52 = vld [vmem:[#allocation7 + $0xc] sm:$0xf0]  ;;  %v1377_v30 = vld [vmem:[#allocation7 + $0x178] sm:$0xf0]  ;;  %v1366_v35 = vld [vmem:[#allocation7 + $0x124] sm:$0xf]  ;;  %v1269_v39 = vor.u32 %v1393_v26, %v1266_v28 }
  0x43   : > { %747 = vmatpush.bf16.msra.mxu1 %v1265_v33  ;;  %v1017_v27 = vor.u32 %v1330_v20, %v1014_v52  ;;  %v1204_v33 = vld [vmem:[#allocation7 + $0x180] sm:$0xf]  ;;  %v1158_v36 = vld [vmem:[#allocation7 + $0x12c] sm:$0xf0]  ;;  %v1201_v37 = vor.u32 %v1377_v30, %v1200_v29  ;;  %v1353_v40 = vld [vmem:[#allocation7 + $0xb8] sm:$0xf0] }
  0x44   : > { %762 = vmatpush.bf16.msrb.mxu2 %v1053_v42  ;;  %726 = vmatpush.bf16.msra.mxu3 %v1013_v57  ;;  %v1104_v38 = vld [vmem:[#allocation7 + $0xb0] sm:$0xf]  ;;  %v1188_v41 = vld [vmem:[#allocation7 + $0x158] sm:$0xf]  ;;  %v1374_v42 = vld [vmem:[#allocation7 + $0x160] sm:$0xf0]  ;;  %v1205_v46 = vor.u32 %v1379_v34, %v1204_v33  ;;  %v1161_v47 = vor.u32 %v1366_v35, %v1158_v36 }
  0x45   : > { %v1390_v44 = vld [vmem:[#allocation7 + $0x1e4] sm:$0xf]  ;;  %v1363_v48 = vld [vmem:[#allocation7 + $0x10c] sm:$0xf]  ;;  %v1146_v49 = vld [vmem:[#allocation7 + $0x114] sm:$0xf0]  ;;  %v1105_v50 = vor.u32 %v1353_v40, %v1104_v38  ;;  %v1189_v51 = vor.u32 %v1374_v42, %v1188_v41 }
  0x46   : > { %739 = vmatpush.bf16.msra.mxu0 %v1109_v6  ;;  %v1092_v53 = vld [vmem:[#allocation7 + $0x98] sm:$0xf]  ;;  %v1350_v55 = vld [vmem:[#allocation7 + $0xa0] sm:$0xf0]  ;;  %v1176_v56 = vld [vmem:[#allocation7 + $0x140] sm:$0xf]  ;;  %v1149_v60 = vor.u32 %v1363_v48, %v1146_v49 }
  0x47   : > { %748 = vmatpush.bf16.msra.mxu1 %v1253_v45  ;;  %727 = vmatmul.bf16.vlgmr.msra.gmra.mxu3 %v1831_v13  ;;  %v1254_v45 = vld [vmem:[#allocation7 + $0x1ec] sm:$0xf0]  ;;  %v1371_v57 = vld [vmem:[#allocation7 + $0x148] sm:$0xf0]  ;;  %v1242_v59 = vld [vmem:[#allocation7 + $0x1d4] sm:$0xf0]  ;;  %v1093_v63 = vor.u32 %v1350_v55, %v1092_v53 }
  0x48   : > { %763 = vmatpush.bf16.msrb.mxu2 %v1041_v58  ;;  %771 = vmatpush.bf16.msrb.mxu3 %v1197_v62  ;;  %v1257_v54 = vor.u32 %v1390_v44, %v1254_v45  ;;  %v1387_v58 = vld [vmem:[#allocation7 + $0x1cc] sm:$0xf]  ;;  %v1134_v62 = vld [vmem:[#allocation7 + $0xfc] sm:$0xf0]  ;;  %v1177_v0 = vor.u32 %v1371_v57, %v1176_v56  ;;  %v1164_v8 = vld [vmem:[#allocation7 + $0x128] sm:$0xf] }
  0x49   : > { %740 = vmatmul.bf16.vlgmr.msra.gmra.mxu0 %v1833_v22  ;;  %v1080_v5 = vld [vmem:[#allocation7 + $0x80] sm:$0xf]  ;;  %v1245_v6 = vor.u32 %v1387_v58, %v1242_v59  ;;  %v1347_v7 = vld [vmem:[#allocation7 + $0x88] sm:$0xf0]  ;;  %v1368_v9 = vld [vmem:[#allocation7 + $0x130] sm:$0xf0] }
  0x4a   : > { %784 = vmatpush.bf16.msrb.mxu0 %v1293_v14  ;;  %v1384_v12 = vld [vmem:[#allocation7 + $0x1b4] sm:$0xf]  ;;  %v1230_v14 = vld [vmem:[#allocation7 + $0x1bc] sm:$0xf0]  ;;  %v1357_v16 = vld [vmem:[#allocation7 + $0xdc] sm:$0xf] }
  0x4b   : > { %749 = vmatpush.bf16.msra.mxu1 %v1241_v61  ;;  %v1360_v61 = vld [vmem:[#allocation7 + $0xf4] sm:$0xf]  ;;  %v1122_v17 = vld [vmem:[#allocation7 + $0xe4] sm:$0xf0]  ;;  %v1233_v52 = vor.u32 %v1384_v12, %v1230_v14  ;;  %v1152_v23 = vld [vmem:[#allocation7 + $0x110] sm:$0xf] }
  0x4c   : > { %764 = vmatpush.bf16.msrb.mxu2 %v1029_v15  ;;  %772 = vmatpush.bf16.msrb.mxu3 %v1185_v19  ;;  %v1137_v15 = vor.u32 %v1360_v61, %v1134_v62  ;;  %v1165_v19 = vor.u32 %v1368_v9, %v1164_v8  ;;  %v1068_v20 = vld [vmem:[#allocation7 + $0x68] sm:$0xf]  ;;  %v1344_v21 = vld [vmem:[#allocation7 + $0x70] sm:$0xf0]  ;;  %v1365_v10 = vld [vmem:[#allocation7 + $0x118] sm:$0xf0]  ;;  %v1125_v26 = vor.u32 %v1357_v16, %v1122_v17 }
  0x4d   : > { %v1381_v24 = vld [vmem:[#allocation7 + $0x19c] sm:$0xf]  ;;  %v1110_v28 = vld [vmem:[#allocation7 + $0xcc] sm:$0xf0]  ;;  %v1378_v29 = vld [vmem:[#allocation7 + $0x184] sm:$0xf] }
  0x4e   : > { %785 = vmatpush.bf16.msrb.mxu0 %v1281_v25  ;;  %v1218_v25 = vld [vmem:[#allocation7 + $0x1a4] sm:$0xf0]  ;;  %v1296_v30 = vld [vmem:[#allocation7 + $0x230] sm:$0xf]  ;;  %v1401_v34 = vld [vmem:[#allocation7 + $0x238] sm:$0xf0] }
  0x4f   : > { %750 = vmatpush.bf16.msra.mxu1 %v1229_v18  ;;  %v1081_v18 = vor.u32 %v1347_v7, %v1080_v5  ;;  %v1221_v33 = vor.u32 %v1381_v24, %v1218_v25  ;;  %v1056_v35 = vld [vmem:[#allocation7 + $0x50] sm:$0xf]  ;;  %v1341_v36 = vld [vmem:[#allocation7 + $0x58] sm:$0xf0]  ;;  %v1140_v38 = vld [vmem:[#allocation7 + $0xf8] sm:$0xf]  ;;  %v1297_v41 = vor.u32 %v1401_v34, %v1296_v30 }
  0x50   : > { %765 = vmatpush.bf16.msrb.mxu2 %v1017_v27  ;;  %773 = vmatpush.bf16.msrb.mxu3 %v1173_v32  ;;  %v1354_v27 = vld [vmem:[#allocation7 + $0xc4] sm:$0xf]  ;;  %v1153_v32 = vor.u32 %v1365_v10, %v1152_v23  ;;  %v1057_v42 = vor.u32 %v1341_v36, %v1056_v35  ;;  %v1284_v44 = vld [vmem:[#allocation7 + $0x218] sm:$0xf]  ;;  %v1128_v49 = vld [vmem:[#allocation7 + $0xe0] sm:$0xf] }
  0x51   : > { %v1113_v40 = vor.u32 %v1354_v27, %v1110_v28  ;;  %v1398_v45 = vld [vmem:[#allocation7 + $0x220] sm:$0xf0]  ;;  %v1272_v53 = vld [vmem:[#allocation7 + $0x200] sm:$0xf]  ;;  %v1260_v58 = vld [vmem:[#allocation7 + $0x1e8] sm:$0xf] }
  0x52   : > { %786 = vmatpush.bf16.msrb.mxu0 %v1269_v39  ;;  %v1362_v39 = vld [vmem:[#allocation7 + $0x100] sm:$0xf0]  ;;  %v1392_v59 = vld [vmem:[#allocation7 + $0x1f0] sm:$0xf0]  ;;  %v1248_v61 = vld [vmem:[#allocation7 + $0x1d0] sm:$0xf] }
  0x53   : > { %751 = vmatpush.bf16.msra.mxu1 %v1217_v31  ;;  %766 = vmatmul.bf16.vlgmr.msrb.gmra.mxu2 %v1831_v13  ;;  %v1069_v31 = vor.u32 %v1344_v21, %v1068_v20  ;;  %v1338_v48 = vld [vmem:[#allocation7 + $0x40] sm:$0xf0]  ;;  %v1389_v62 = vld [vmem:[#allocation7 + $0x1d8] sm:$0xf0]  ;;  %v1224_v7 = vld [vmem:[#allocation7 + $0x1a0] sm:$0xf] }
  0x54   : > { %810 = vmatpush.bf16.msra.mxu2 %v1201_v37  ;;  %774 = vmatpush.bf16.msrb.mxu3 %v1161_v47  ;;  %v1206_v37 = vld [vmem:[#allocation7 + $0x18c] sm:$0xf0]  ;;  %v1044_v47 = vld [vmem:[#allocation7 + $0x38] sm:$0xf]  ;;  %v1386_v5 = vld [vmem:[#allocation7 + $0x1c0] sm:$0xf0] }
  0x55   : > { %v1209_v43 = vor.u32 %v1378_v29, %v1206_v37  ;;  %v1045_v55 = vor.u32 %v1338_v48, %v1044_v47  ;;  %v1383_v8 = vld [vmem:[#allocation7 + $0x1a8] sm:$0xf0]  ;;  %v1032_v12 = vld [vmem:[#allocation7 + $0x20] sm:$0xf]  ;;  %v1356_v17 = vld [vmem:[#allocation7 + $0xd0] sm:$0xf0] }
  0x56   : > { %787 = vmatpush.bf16.msrb.mxu0 %v1257_v54  ;;  %v1395_v54 = vld [vmem:[#allocation7 + $0x208] sm:$0xf0]  ;;  %v1225_v9 = vor.u32 %v1383_v8, %v1224_v7  ;;  %v1020_v21 = vld [vmem:[#allocation7 + $0x8] sm:$0xf]  ;;  %v1332_v23 = vld [vmem:[#allocation7 + $0x10] sm:$0xf0] }
  0x57   : > { %752 = vmatpush.bf16.msra.mxu1 %v1205_v46  ;;  %v1141_v46 = vor.u32 %v1362_v39, %v1140_v38  ;;  %v1273_v57 = vor.u32 %v1395_v54, %v1272_v53  ;;  %v1335_v14 = vld [vmem:[#allocation7 + $0x28] sm:$0xf0]  ;;  %v1021_v10 = vor.u32 %v1332_v23, %v1020_v21  ;;  %v1412_v24 = vld [vmem:[#allocation10 + $0x38] sm:$0xff]  ;;  %v1411_v25 = vld [vmem:[#allocation10 + $0x30] sm:$0xff]  ;;  %s926_s8 = scalar_lea.vmem [#allocation11], %s994_s5  ;;  %s132_s4 = sadd.s32 1, %s1707_s4  }
  0x58   : > { %811 = vmatpush.bf16.msra.mxu2 %v1189_v51  ;;  %775 = vmatpush.bf16.msrb.mxu3 %v1149_v60  ;;  %v1285_v51 = vor.u32 %v1398_v45, %v1284_v44  ;;  %v1261_v60 = vor.u32 %v1392_v59, %v1260_v58  ;;  %v1033_v16 = vor.u32 %v1335_v14, %v1032_v12  ;;  %v1409_v28 = vld [vmem:[#allocation10 + $0x20] sm:$0xff]  ;;  %v1408_v29 = vld [vmem:[#allocation10 + $0x18] sm:$0xff]  ;;  %p129_p0 = scmp.ge.s32.totalorder %s132_s4, 8  }
  0x59   :  { %s939_s11 = sshll.u32 (%p129_p0), %s1881_s6, 4  ;;  %s1720_s12 = smov (%p129_p0), [#allocation11]   ;;  %s940_s11 = int_to_ptr.hbm [resolvable:$true] %s939_s11 }
  0x5a   : > { %753 = vmatmul.bf16.vlgmr.msra.gmra.mxu1 %v1839_v11  ;;  %788 = vmatpush.bf16.msrb.mxu0 %v1245_v6  ;;  %s937_s13 = sshll.u32 (%p129_p0), %s1720_s12, 4  ;;  %s1721_s1 = smov (%p129_p0), [#allocation12]   ;;  %s938_s13 = int_to_ptr.vmem [resolvable:$true] %s937_s13 }
  0x5b   : > { %797 = vmatpush.bf16.msrb.mxu1 %v1105_v50  ;;  %v1359_v50 = vld [vmem:[#allocation7 + $0xe8] sm:$0xf0]  ;;  %s951_s14 = sshll.u32 (%p129_p0), %s1721_s1, 4  ;;  %s953_s17 = sshll.u32 (%p129_p0), %s1882_s7, 4  ;;  %s952_s14 = int_to_ptr.vmem [resolvable:$true] %s951_s14  ;;  %s954_s17 = int_to_ptr.hbm [resolvable:$true] %s953_s17 }
  0x5c   : > { %812 = vmatpush.bf16.msra.mxu2 %v1177_v0  ;;  %776 = vmatpush.bf16.msrb.mxu3 %v1137_v15  ;;  %v1129_v56 = vor.u32 %v1359_v50, %v1128_v49  ;;  %v1236_v0 = vld [vmem:[#allocation7 + $0x1b8] sm:$0xf]  ;;  %v1116_v15 = vld [vmem:[#allocation7 + $0xc8] sm:$0xf] }
  0x5d   : > { %v1237_v6 = vor.u32 %v1386_v5, %v1236_v0  ;;  %v1117_v20 = vor.u32 %v1356_v17, %v1116_v15 }
  0x5e   : > { %789 = vmatpush.bf16.msrb.mxu0 %v1233_v52 }
  0x5f   : > { %798 = vmatpush.bf16.msrb.mxu1 %v1093_v63  ;;  %v1249_v63 = vor.u32 %v1389_v62, %v1248_v61 }
  0x60   : > { %813 = vmatpush.bf16.msra.mxu2 %v1165_v19  ;;  %777 = vmatpush.bf16.msrb.mxu3 %v1125_v26  ;;  %v1380_v19 = vld [vmem:[#allocation7 + $0x190] sm:$0xf0]  ;;  %v1410_v26 = vld [vmem:[#allocation10 + $0x28] sm:$0xff] }
  0x62   : > { %790 = vmatpush.bf16.msrb.mxu0 %v1221_v33  ;;  %v1405_v33 = vld [vmem:[#allocation10] sm:$0xff] }
  0x63   : > { %799 = vmatpush.bf16.msrb.mxu1 %v1081_v18  ;;  %v1212_v18 = vld [vmem:[#allocation7 + $0x188] sm:$0xf] }
  0x64   : > { %814 = vmatpush.bf16.msra.mxu2 %v1153_v32  ;;  %778 = vmatpush.bf16.msrb.mxu3 %v1113_v40  ;;  %v1213_v52 = vor.u32 %v1380_v19, %v1212_v18  ;;  %v1407_v32 = vld [vmem:[#allocation10 + $0x10] sm:$0xff] }
  0x66   : > { %791 = vmatpush.bf16.msrb.mxu0 %v1209_v43 }
  0x67   : > { %800 = vmatpush.bf16.msrb.mxu1 %v1069_v31  ;;  %779 = vmatmul.bf16.vlgmr.msrb.gmra.mxu3 %v1833_v22 }
  0x68   : > { %823 = vmatpush.bf16.msra.mxu3 %v1297_v41  ;;  %815 = vmatpush.bf16.msra.mxu2 %v1141_v46  ;;  %v321_v41 = vmul.f32 0.9, %v1703_v2 }
  0x69   : > { %792 = vmatmul.bf16.vlgmr.msrb.gmra.mxu0 %v1839_v11 }
  0x6a   : > { %913 = vmatpush.bf16.msra.mxu0 %v1412_v24 }
  0x6b   : > { %801 = vmatpush.bf16.msrb.mxu1 %v1057_v42 }
  0x6c   : > { %824 = vmatpush.bf16.msra.mxu3 %v1285_v51  ;;  %816 = vmatpush.bf16.msra.mxu2 %v1129_v56 }
  0x6e   : > { %914 = vmatpush.bf16.msra.mxu0 %v1411_v25 }
  0x6f   : > { %802 = vmatpush.bf16.msrb.mxu1 %v1045_v55 }
  0x70   : > { %825 = vmatpush.bf16.msra.mxu3 %v1273_v57  ;;  %817 = vmatpush.bf16.msra.mxu2 %v1117_v20  ;;  %v322_v57 = vmul.f32 0.9, %v1699_v3 }
  0x72   : > { %915 = vmatpush.bf16.msra.mxu0 %v1410_v26 }
  0x73   : > { %803 = vmatpush.bf16.msrb.mxu1 %v1033_v16  ;;  %818 = vmatmul.bf16.vlgmr.msra.gmra.mxu2 %v1833_v22  ;;  %v1406_v22 = vld [vmem:[#allocation10 + $0x8] sm:$0xff] }
  0x74   : > { %826 = vmatpush.bf16.msra.mxu3 %v1261_v60 }
  0x76   : > { %916 = vmatpush.bf16.msra.mxu0 %v1409_v28 }
  0x77   : > { %804 = vmatpush.bf16.msrb.mxu1 %v1021_v10 }
  0x78   : > { %827 = vmatpush.bf16.msra.mxu3 %v1249_v63 }
  0x7a   : > { %805 = vmatmul.bf16.vlgmr.msrb.gmra.mxu1 %v1831_v13  ;;  %917 = vmatpush.bf16.msra.mxu0 %v1408_v29 }
  0x7c   : > { %828 = vmatpush.bf16.msra.mxu3 %v1237_v6 }
  0x7e   : > { %918 = vmatpush.bf16.msra.mxu0 %v1407_v32 }
  0x80   : > { %829 = vmatpush.bf16.msra.mxu3 %v1225_v9  ;;  %v323_v9 = vmul.f32 0.9, %v1695_v4 }
  0x82   : > { %919 = vmatpush.bf16.msra.mxu0 %v1406_v22 }
  0x84   : > { %830 = vmatpush.bf16.msra.mxu3 %v1213_v52 }
  0x86   : > { %920 = vmatpush.bf16.msra.mxu0 %v1405_v33 }
  0x87   : > { %831 = vmatmul.bf16.vlgmr.msra.gmra.mxu3 %v1839_v11 }
  0xaf   : > { %v291_v27 = vpop.f32.mrf.mxu1 }
  0xb6   : > { %v317_v30 = vpop.f32.mrf.mxu2 }
  0xb7   : > { %v293_v31 = vpop.f32.mrf.mxu1 }
  0xbe   : > { %v319_v11 = vpop.f32.mrf.mxu2 }
  0xbf   : > { %v304_v13 = vpop.f32.mrf.mxu1 }
  0xc6   : > { %v741_v35 = vpop.f32.mrf.mxu0 }
  0xc7   : > { %v306_v34 = vpop.f32.mrf.mxu1 }
  0xca   : > { %v728_v36 = vpop.f32.mrf.mxu3 }
  0xcb   : > { %v729_v37 = vadd.f32 %v728_v36, %v291_v27 }
  0xcd   : > { %v742_v39 = vadd.f32 %v741_v35, %v729_v37 }
  0xce   : > { %v743_v38 = vpop.f32.mrf.mxu0 }
  0xd2   : > { %v730_v43 = vpop.f32.mrf.mxu3 }
  0xd6   : > { %v767_v44 = vpop.f32.mrf.mxu2 }
  0xd7   : > { %v754_v40 = vpop.f32.mrf.mxu1  ;;  %v768_v45 = vadd.f32 %v767_v44, %v304_v13 }
  0xd8   : > { %v755_v42 = vadd.f32 %v754_v40, %v742_v39 }
  0xda   : > { %v836_v46 = vmul.f32 0.1, %v755_v42 }
  0xdc   : > { %v839_v47 = vadd.f32 %v836_v46, %v321_v41  }
  0xde   : > { %1477 = vtanh.f32 %v839_v47  ;;  %v769_v49 = vpop.f32.mrf.mxu2  ;;  %930 = vst [vmem:[#allocation12] sm:$0xff] (%p129_p0), %v839_v47 }
  0xdf   : > { %v756_v48 = vpop.f32.mrf.mxu1 }
  0xe4   : > { %v1478_v50 = vpop.eup %1477 }
  0xe5   : > { %v845_v51 = vmax.f32 %v1478_v50, 0.0 }
  0xe6   : > { %v793_v54 = vpop.f32.mrf.mxu0 }
  0xe7   : > { %v848_v53 = vpack.c.bf16 %v845_v51, %v845_v51 }
  0xe9   : > { %921 = vmatmul.bf16.vlgmr.msra.gmra.mxu0 %v848_v53 }
  0xea   : > { %v780_v55 = vpop.f32.mrf.mxu3 }
  0xeb   : > { %v781_v56 = vadd.f32 %v780_v55, %v768_v45 }
  0xed   : > { %v794_v58 = vadd.f32 %v793_v54, %v781_v56 }
  0xee   : > { %v795_v2 = vpop.f32.mrf.mxu0 }
  0xef   : > { %v837_v59 = vmul.f32 0.1, %v794_v58  ;;  %v1885_v2 = vmov %v839_v47 }
  0xf1   : > { %v840_v60 = vadd.f32 %v837_v59, %v322_v57  }
  0xf2   : > { %v782_v61 = vpop.f32.mrf.mxu3 }
  0xf3   : > { %1479 = vtanh.f32 %v840_v60  ;;  %931 = vst [vmem:[#allocation12 + $0x8] sm:$0xff] (%p129_p0), %v840_v60 }
  0xf6   : > { %v819_v6 = vpop.f32.mrf.mxu2 }
  0xf7   : > { %v806_v0 = vpop.f32.mrf.mxu1 }
  0xf8   : > { %v807_v5 = vadd.f32 %v806_v0, %v317_v30 }
  0xf9   : > { %v1480_v62 = vpop.eup %1479 }
  0xfa   : > { %v846_v63 = vmax.f32 %v1480_v62, 0.0  ;;  %v820_v7 = vadd.f32 %v819_v6, %v807_v5 }
  0xfc   : > { %v928_v10 = vpack.c.bf16 %v846_v63, %v845_v51  }
  0xfe   : > { %v821_v16 = vpop.f32.mrf.mxu2 }
  0xff   : > { %v808_v3 = vpop.f32.mrf.mxu1 }
 0x100   : > { %v1884_v3 = vmov %v840_v60 }
 0x10a   : > { %v832_v8 = vpop.f32.mrf.mxu3 }
 0x10b   : > { %v833_v12 = vadd.f32 %v832_v8, %v820_v7 }
 0x10d   : > { %v838_v14 = vmul.f32 0.1, %v833_v12 }
 0x10f   : > { %v841_v15 = vadd.f32 %v838_v14, %v323_v9  }
 0x111   : > { %1481 = vtanh.f32 %v841_v15  ;;  %v1883_v4 = vmov %v841_v15  ;;  %932 = vst [vmem:[#allocation12 + $0x10] sm:$0xff] (%p129_p0), %v841_v15 }
 0x112   : > { %v834_v17 = vpop.f32.mrf.mxu3  ;;  %956 = dma.vmem_to_hbm [thread:$0]  (%p129_p0), %s952_s14, 384, %s954_s17, [#allocation13]  }
 0x117   : > { %v1482_v18 = vpop.eup %1481 }
 0x118   : > { %v847_v19 = vmax.f32 %v1482_v18, 0.0 }
 0x11a   : > { %v929_v11 = vpack.c.bf16 %v847_v19, %v847_v19  }
 0x166   : > { %v922_v20 = vpop.f32.mrf.mxu0 }
 0x167   : > { %v923_v52 = vadd.f32 %v1783_v1, %v922_v20 }
 0x169   : > { %927 = vst [vmem:[%s926_s8] sm:$0xff] %v923_v52 }
 0x16a   :  { %131 = sbr.rel (!%p129_p0) target bundleno = 37 (0x25), region = 81 }
 0x16b   :  { %945 = dma.vmem_to_hbm [thread:$0]  (%p129_p0), %s938_s13, 1024, %s940_s11, [#allocation4], %s1714_s3, %s1714_s3, %s1715_s20  }
 0x16e   : > { %v924_v21 = vpop.f32.mrf.mxu0 }
 0x16f   :  { %1681 = dma.done.wait [#allocation4], 1024  }
 0x170   :  { %1682 = vsyncadd [#allocation4], 4294966272 }
 0x171   :  { %1683 = dma.done.wait [#allocation13], 384  }
 0x172   :  { %1684 = vsyncadd [#allocation13], 4294966912 }
 0x173   :  { %965 = vsyncpa [#allocation3], 1 }
 0x174   :  { %966 = vsyncpa [#allocation6], 1 }
 0x175   :  { %967 = vsyncpa [#allocation9], 1 }
 0x176   :  { %968 = vsyncpa [#allocation4], 1 }
 0x177   :  { %969 = vsyncpa [#allocation13], 1 }

</bundles_post_ra>
